<compile_context>
chip_gen: v7x
topology: tpu7x:2x2x1
jax: 0.10.0
libtpu: 0.0.40
codegen_flags: <defaults>
</compile_context>

<pallas_src>
import functools

import jax
import jax.numpy as jnp
from jax import lax
from jax.experimental import pallas as pl
from jax.experimental.pallas import tpu as pltpu


def _round_up(x, m):
    return (x + m - 1) // m * m


def _lmde_kernel(gx_ref, gy_ref, px_ref, py_ref, av_ref, out_ref, acc_ref,
                 *, rows, t_valid, tb, denom):
    pid = pl.program_id(0)

    @pl.when(pid == 0)
    def _init():
        acc_ref[0] = jnp.float32(0.0)

    # Lane-dense (TB, Tp) tiles: rows on sublanes, time on the 128-lane axis.
    dx = (gx_ref[...] - px_ref[...]) * av_ref[...]
    dy = (gy_ref[...] - py_ref[...]) * av_ref[...]
    err = dx * dx + dy * dy                                     # (TB, Tp)

    # Padded time lanes -> -inf so they contribute exp(-inf) = 0 to the
    # logsumexp (avails padding with 0 alone is NOT sufficient).
    lane = lax.broadcasted_iota(jnp.int32, err.shape, 1)
    err = jnp.where(lane < t_valid, err, -jnp.inf)

    # Stable logsumexp over the time axis.
    m = jnp.max(err, axis=-1, keepdims=True)                    # (TB, 1)
    lse = m + jnp.log(jnp.sum(jnp.exp(err - m), axis=-1, keepdims=True))
    neg = -lse                                                  # (TB, 1)

    # Zero out padded rows (beyond bs*modes) before accumulation.
    row = lax.broadcasted_iota(jnp.int32, neg.shape, 0) + pid * tb
    neg = jnp.where(row < rows, neg, 0.0)

    acc_ref[0] += jnp.sum(neg)

    @pl.when(pid == pl.num_programs(0) - 1)
    def _finalize():
        out_ref[0, 0] = acc_ref[0] / jnp.float32(denom)


def log_mean_displacement_error(y, y_pred, avails):
    # Widen once in the wrapper (cheap here; matters if inputs arrive as bf16,
    # especially on v5e which has no bf16 VPU/EUP path).
    y = jnp.asarray(y, jnp.float32)
    y_pred = jnp.asarray(y_pred, jnp.float32)
    avails = jnp.asarray(avails, jnp.float32)

    bs, modes, T, D = y_pred.shape
    assert D == 2
    assert y.shape == (bs, T, D)
    assert avails.shape == (bs, T)

    rows = bs * modes                       # mean denominator (bs*modes*1)
    Tp = _round_up(T, 128)                  # lane-dense time axis
    TB = min(512, _round_up(rows, 8))       # row tile; small enough for VMEM
    rows_p = _round_up(rows, TB)            # exact grid coverage

    # Wrapper-side layout plumbing only: split coords into x / y slabs,
    # broadcast ground truth / avails over modes, pad to (rows_p, Tp).
    px = y_pred[..., 0].reshape(rows, T)
    py = y_pred[..., 1].reshape(rows, T)
    gx = jnp.broadcast_to(y[:, None, :, 0], (bs, modes, T)).reshape(rows, T)
    gy = jnp.broadcast_to(y[:, None, :, 1], (bs, modes, T)).reshape(rows, T)
    av = jnp.broadcast_to(avails[:, None, :], (bs, modes, T)).reshape(rows, T)

    pad = ((0, rows_p - rows), (0, Tp - T))
    gx, gy, px, py, av = [jnp.pad(a, pad) for a in (gx, gy, px, py, av)]

    row_spec = pl.BlockSpec((TB, Tp), lambda i: (i, 0))
    kernel = functools.partial(
        _lmde_kernel, rows=rows, t_valid=T, tb=TB, denom=rows)

    out = pl.pallas_call(
        kernel,
        out_shape=jax.ShapeDtypeStruct((1, 1), jnp.float32),
        grid=(rows_p // TB,),
        in_specs=[row_spec, row_spec, row_spec, row_spec, row_spec],
        out_specs=pl.BlockSpec(memory_space=pltpu.MemorySpace.SMEM),
        scratch_shapes=[pltpu.SMEM((1,), jnp.float32)],
        compiler_params=pltpu.CompilerParams(
            dimension_semantics=("arbitrary",),   # accumulation axis
            vmem_limit_bytes=32 * 1024 * 1024,    # safe on v5e/v6e/v7x
        ),
    )(gx, gy, px, py, av)
    return out[0, 0]


def _reference(y, y_pred, avails):
    y = y[:, None, :, :]
    av = avails[:, None, :, None]
    error = jnp.sum(((y - y_pred) * av) ** 2, axis=-1)
    error = -jax.scipy.special.logsumexp(error, axis=-1, keepdims=True)
    return jnp.mean(error)


if __name__ == "__main__":
    key = jax.random.PRNGKey(0)
    k1, k2, k3 = jax.random.split(key, 3)

    bs, modes, T, D = 2, 4, 8, 2
    y = jax.random.normal(k1, (bs, T, D), dtype=jnp.float32)
    y_pred = jax.random.normal(k2, (bs, modes, T, D), dtype=jnp.float32)
    # availability mask of 0/1 values
    avails = (jax.random.uniform(k3, (bs, T)) > 0.3).astype(jnp.float32)

    out = log_mean_displacement_error(y, y_pred, avails)
    out = jax.block_until_ready(out)

    ref = _reference(y, y_pred, avails)
    assert jnp.allclose(out, ref, rtol=1e-5, atol=1e-5), (out, ref)

    print("KERNEL_OK")
</pallas_src>

<mosaic_0001>
module attributes {stable_mosaic.version = 11 : i64} {
  func.func @_lmde_kernel(%arg0: i32, %arg1: memref<8x128xf32, #tpu.memory_space<vmem>>, %arg2: memref<8x128xf32, #tpu.memory_space<vmem>>, %arg3: memref<8x128xf32, #tpu.memory_space<vmem>>, %arg4: memref<8x128xf32, #tpu.memory_space<vmem>>, %arg5: memref<8x128xf32, #tpu.memory_space<vmem>>, %arg6: memref<1x1xf32, #tpu.memory_space<smem>>, %arg7: memref<1xf32, #tpu.memory_space<smem>>) attributes {dimension_semantics = [#tpu.dimension_semantics<arbitrary>], iteration_bounds = array<i64: 1>, scalar_prefetch = 0 : i64, scratch_operands = 1 : i64, tpu.core_type = #tpu.core_type<tc>, window_params = [{transform_indices = @transform_0, window_bounds = array<i64: 8, 128>}, {transform_indices = @transform_1, window_bounds = array<i64: 8, 128>}, {transform_indices = @transform_2, window_bounds = array<i64: 8, 128>}, {transform_indices = @transform_3, window_bounds = array<i64: 8, 128>}, {transform_indices = @transform_4, window_bounds = array<i64: 8, 128>}, {transform_indices = @transform_5, window_bounds = array<i64: 1, 1>}]} {
    %c0_i32 = arith.constant 0 : i32
    %0 = arith.cmpi eq, %arg0, %c0_i32 : i32
    %1 = arith.extui %0 : i1 to i32
    %c0_i32_0 = arith.constant 0 : i32
    %2 = arith.cmpi ne, %1, %c0_i32_0 : i32
    scf.if %2 {
      %cst_23 = arith.constant 0.000000e+00 : f32
      %c0_24 = arith.constant 0 : index
      %50 = memref.load %arg7[%c0_24] : memref<1xf32, #tpu.memory_space<smem>>
      memref.store %cst_23, %arg7[%c0_24] : memref<1xf32, #tpu.memory_space<smem>>
    } else {
    }
    %c0 = arith.constant 0 : index
    %c0_1 = arith.constant 0 : index
    %3 = vector.load %arg1[%c0, %c0_1] : memref<8x128xf32, #tpu.memory_space<vmem>>, vector<8x128xf32>
    %c0_2 = arith.constant 0 : index
    %c0_3 = arith.constant 0 : index
    %4 = vector.load %arg3[%c0_2, %c0_3] : memref<8x128xf32, #tpu.memory_space<vmem>>, vector<8x128xf32>
    %5 = arith.subf %3, %4 : vector<8x128xf32>
    %c0_4 = arith.constant 0 : index
    %c0_5 = arith.constant 0 : index
    %6 = vector.load %arg5[%c0_4, %c0_5] : memref<8x128xf32, #tpu.memory_space<vmem>>, vector<8x128xf32>
    %7 = arith.mulf %5, %6 : vector<8x128xf32>
    %c0_6 = arith.constant 0 : index
    %c0_7 = arith.constant 0 : index
    %8 = vector.load %arg2[%c0_6, %c0_7] : memref<8x128xf32, #tpu.memory_space<vmem>>, vector<8x128xf32>
    %c0_8 = arith.constant 0 : index
    %c0_9 = arith.constant 0 : index
    %9 = vector.load %arg4[%c0_8, %c0_9] : memref<8x128xf32, #tpu.memory_space<vmem>>, vector<8x128xf32>
    %10 = arith.subf %8, %9 : vector<8x128xf32>
    %c0_10 = arith.constant 0 : index
    %c0_11 = arith.constant 0 : index
    %11 = vector.load %arg5[%c0_10, %c0_11] : memref<8x128xf32, #tpu.memory_space<vmem>>, vector<8x128xf32>
    %12 = arith.mulf %10, %11 : vector<8x128xf32>
    %13 = arith.mulf %7, %7 : vector<8x128xf32>
    %14 = arith.mulf %12, %12 : vector<8x128xf32>
    %15 = arith.addf %13, %14 : vector<8x128xf32>
    %16 = tpu.iota {dimensions = array<i32: 1>} : vector<8x128xi32>
    %c8_i32 = arith.constant 8 : i32
    %17 = vector.broadcast %c8_i32 : i32 to vector<8x128xi32>
    %18 = arith.cmpi slt, %16, %17 : vector<8x128xi32>
    %cst = arith.constant 0xFF800000 : f32
    %19 = vector.broadcast %cst : f32 to vector<8x128xf32>
    %20 = arith.select %18, %15, %19 : vector<8x128xi1>, vector<8x128xf32>
    %cst_12 = arith.constant dense<0xFF800000> : vector<8xf32>
    %21 = vector.multi_reduction <maximumf>, %20, %cst_12 [1] : vector<8x128xf32> to vector<8xf32>
    %22 = vector.shape_cast %21 : vector<8xf32> to vector<8x1xf32>
    %23 = vector.broadcast %22 : vector<8x1xf32> to vector<8x128xf32>
    %24 = arith.subf %20, %23 : vector<8x128xf32>
    %25 = math.exp %24 : vector<8x128xf32>
    %cst_13 = arith.constant dense<0.000000e+00> : vector<8xf32>
    %26 = vector.multi_reduction <add>, %25, %cst_13 [1] : vector<8x128xf32> to vector<8xf32>
    %27 = vector.shape_cast %26 : vector<8xf32> to vector<8x1xf32>
    %28 = math.log %27 : vector<8x1xf32>
    %29 = arith.addf %22, %28 : vector<8x1xf32>
    %cst_14 = arith.constant 0.000000e+00 : f32
    %30 = vector.broadcast %cst_14 : f32 to vector<8x1xf32>
    %31 = arith.subf %30, %29 : vector<8x1xf32>
    %32 = tpu.iota {dimensions = array<i32: 0>} : vector<8x1xi32>
    %c8_i32_15 = arith.constant 8 : i32
    %33 = arith.muli %arg0, %c8_i32_15 : i32
    %34 = vector.broadcast %33 : i32 to vector<8x1xi32>
    %35 = arith.addi %32, %34 : vector<8x1xi32>
    %c8_i32_16 = arith.constant 8 : i32
    %36 = vector.broadcast %c8_i32_16 : i32 to vector<8x1xi32>
    %37 = arith.cmpi slt, %35, %36 : vector<8x1xi32>
    %cst_17 = arith.constant 0.000000e+00 : f32
    %38 = vector.broadcast %cst_17 : f32 to vector<8x1xf32>
    %39 = arith.select %37, %31, %38 : vector<8x1xi1>, vector<8x1xf32>
    %c0_18 = arith.constant 0 : index
    %40 = memref.load %arg7[%c0_18] : memref<1xf32, #tpu.memory_space<smem>>
    %41 = vector.shape_cast %39 : vector<8x1xf32> to vector<1x8x1xf32>
    %cst_19 = arith.constant dense<0.000000e+00> : vector<1xf32>
    %42 = vector.multi_reduction <add>, %41, %cst_19 [1, 2] : vector<1x8x1xf32> to vector<1xf32>
    %43 = vector.shape_cast %42 : vector<1xf32> to vector<1x1x1xf32>
    %44 = vector.extract %43[0, 0, 0] : f32 from vector<1x1x1xf32>
    %45 = arith.addf %40, %44 : f32
    %c0_20 = arith.constant 0 : index
    %46 = memref.load %arg7[%c0_20] : memref<1xf32, #tpu.memory_space<smem>>
    memref.store %45, %arg7[%c0_20] : memref<1xf32, #tpu.memory_space<smem>>
    %c0_i32_21 = arith.constant 0 : i32
    %47 = arith.cmpi eq, %arg0, %c0_i32_21 : i32
    %48 = arith.extui %47 : i1 to i32
    %c0_i32_22 = arith.constant 0 : i32
    %49 = arith.cmpi ne, %48, %c0_i32_22 : i32
    scf.if %49 {
      %c0_23 = arith.constant 0 : index
      %50 = memref.load %arg7[%c0_23] : memref<1xf32, #tpu.memory_space<smem>>
      %cst_24 = arith.constant 8.000000e+00 : f32
      %51 = arith.divf %50, %cst_24 : f32
      %c0_25 = arith.constant 0 : index
      %c0_26 = arith.constant 0 : index
      %52 = memref.load %arg6[%c0_25, %c0_26] : memref<1x1xf32, #tpu.memory_space<smem>>
      memref.store %51, %arg6[%c0_25, %c0_26] : memref<1x1xf32, #tpu.memory_space<smem>>
    } else {
    }
    return
  }
  func.func @transform_0(%arg0: i32) -> (i32, i32) {
    %c0_i32 = arith.constant 0 : i32
    %c0_i32_0 = arith.constant 0 : i32
    return %arg0, %c0_i32 : i32, i32
  }
  func.func @transform_1(%arg0: i32) -> (i32, i32) {
    %c0_i32 = arith.constant 0 : i32
    %c0_i32_0 = arith.constant 0 : i32
    return %arg0, %c0_i32 : i32, i32
  }
  func.func @transform_2(%arg0: i32) -> (i32, i32) {
    %c0_i32 = arith.constant 0 : i32
    %c0_i32_0 = arith.constant 0 : i32
    return %arg0, %c0_i32 : i32, i32
  }
  func.func @transform_3(%arg0: i32) -> (i32, i32) {
    %c0_i32 = arith.constant 0 : i32
    %c0_i32_0 = arith.constant 0 : i32
    return %arg0, %c0_i32 : i32, i32
  }
  func.func @transform_4(%arg0: i32) -> (i32, i32) {
    %c0_i32 = arith.constant 0 : i32
    %c0_i32_0 = arith.constant 0 : i32
    return %arg0, %c0_i32 : i32, i32
  }
  func.func @transform_5(%arg0: i32) -> (i32, i32) {
    %c0_i32 = arith.constant 0 : i32
    %c0_i32_0 = arith.constant 0 : i32
    %c0_i32_1 = arith.constant 0 : i32
    return %c0_i32, %c0_i32_0 : i32, i32
  }
}

</mosaic_0001>

<bundles_post_ra>
// kernel: tpu_custom_call.1
= control target key start
LH: loop header
LB: loop body
LE: loop exit
PB: predicated region body
PF: predicated region fallthrough
CT: control target
= control target key end

     0   :  { %10 = vsyncpa [#allocation4], 0  ;;  %s363_s0 = inlined_call_operand.hbm [shape: f32[8,128], index: 0, kind: input, shape index: {}]   ;;  %s364_s1 = inlined_call_operand.hbm [shape: f32[8,128], index: 1, kind: input, shape index: {}]   ;;  %s365_s2 = inlined_call_operand.hbm [shape: f32[8,128], index: 2, kind: input, shape index: {}]   ;;  %s366_s3 = inlined_call_operand.vmem [shape: f32[8,128], index: 3, kind: input, shape index: {}]   ;;  %s367_s4 = inlined_call_operand.hbm [shape: f32[8,128], index: 4, kind: input, shape index: {}]   ;;  %s368_s5 = inlined_call_operand.hbm [shape: f32[1,1], index: 5, kind: output, shape index: {}]  }
   0x1   :  { %11 = vsyncpa [#allocation7], 0 }
   0x2   :  { %12 = vsyncpa [#allocation10], 0 }
   0x3   :  { %13 = vsyncpa [#allocation5], 0  ;;  %s265_s18 = smov [#allocation6]   ;;  %s266_s20 = smov [#allocation3]  }
   0x4   :  { %s30_s19 = sshll.u32 %s265_s18, 4  ;;  %s20_s21 = sshll.u32 %s266_s20, 4  ;;  %s31_s19 = int_to_ptr.vmem [resolvable:$true] %s30_s19  ;;  %s21_s21 = int_to_ptr.vmem [resolvable:$true] %s20_s21 }
   0x5   :  { %s159_s24 = scalar_lea.hbm %s364_s1, 128 }
   0x6   :  { %p160_p0 = scmp.ne.s32.totalorder %s364_s1, %s159_s24  ;;  %p163_p1 = scmp.lt.u32.totalorder %s159_s24, %s364_s1 }
   0x8   :  { %p165_p2 = pnand %p163_p1, %p160_p0 }
   0xa   :  { %168 = shalt.err (!%p165_p2)
}
   0xb   :  { %s169_s29 = scalar_lea.vmem %s31_s19, 128  ;;  %p174_p4 = scmp.lt.s32.totalorder %s31_s19, %s31_s19 }
   0xc   :  { %p170_p3 = scmp.ne.s32.totalorder %s31_s19, %s169_s29  ;;  %p175_p5 = scmp.lt.s32.totalorder %s169_s29, %s169_s29 }
   0xe   :  { %p176_p6 = por %p175_p5, %p174_p4 }
  0x10   :  { %p177_p7 = pnand %p176_p6, %p170_p3 }
  0x12   :  { %180 = shalt.err (!%p177_p7)
}
  0x13   :  { %33 = dma.hbm_to_vmem [thread:$0]  %s364_s1, 128, %s31_s19, [#allocation7]  }
  0x14   :  { %s181_s9 = scalar_lea.hbm %s363_s0, 128 }
  0x15   :  { %p182_p8 = scmp.ne.s32.totalorder %s363_s0, %s181_s9  ;;  %p185_p9 = scmp.lt.u32.totalorder %s181_s9, %s363_s0 }
  0x17   :  { %p187_p10 = pnand %p185_p9, %p182_p8 }
  0x19   :  { %190 = shalt.err (!%p187_p10)
}
  0x1a   :  { %s191_s14 = scalar_lea.vmem %s21_s21, 128  ;;  %p196_p12 = scmp.lt.s32.totalorder %s21_s21, %s21_s21 }
  0x1b   :  { %p192_p11 = scmp.ne.s32.totalorder %s21_s21, %s191_s14  ;;  %p197_p13 = scmp.lt.s32.totalorder %s191_s14, %s191_s14 }
  0x1d   :  { %p198_p0 = por %p197_p13, %p196_p12 }
  0x1f   :  { %p199_p1 = pnand %p198_p0, %p192_p11 }
  0x21   :  { %202 = shalt.err (!%p199_p1)
}
  0x22   :  { %23 = dma.hbm_to_vmem [thread:$0]  %s363_s0, 128, %s21_s21, [#allocation4]  }
  0x23   :  { %s267_s16 = smov [#allocation8]   ;;  %s268_s18 = smov [#allocation9]  }
  0x24   :  { %s40_s17 = sshll.u32 %s267_s16, 4  ;;  %s52_s19 = sshll.u32 %s268_s18, 4  ;;  %s41_s17 = int_to_ptr.vmem [resolvable:$true] %s40_s17  ;;  %s53_s19 = int_to_ptr.vmem [resolvable:$true] %s52_s19 }
  0x25   :  { %s203_s23 = scalar_lea.hbm %s365_s2, 128 }
  0x26   :  { %p204_p2 = scmp.ne.s32.totalorder %s365_s2, %s203_s23  ;;  %p207_p3 = scmp.lt.u32.totalorder %s203_s23, %s365_s2 }
  0x28   :  { %p209_p4 = pnand %p207_p3, %p204_p2 }
  0x2a   :  { %212 = shalt.err (!%p209_p4)
}
  0x2b   :  { %s213_s0 = scalar_lea.vmem %s41_s17, 128  ;;  %p218_p6 = scmp.lt.s32.totalorder %s41_s17, %s41_s17 }
  0x2c   :  { %p214_p5 = scmp.ne.s32.totalorder %s41_s17, %s213_s0  ;;  %p219_p7 = scmp.lt.s32.totalorder %s213_s0, %s213_s0 }
  0x2e   :  { %p220_p8 = por %p219_p7, %p218_p6 }
  0x30   :  { %p221_p9 = pnand %p220_p8, %p214_p5 }
  0x32   :  { %224 = shalt.err (!%p221_p9)
}
  0x33   :  { %43 = dma.hbm_to_vmem [thread:$0]  %s365_s2, 128, %s41_s17, [#allocation7]  }
  0x34   :  { %s225_s6 = scalar_lea.hbm %s367_s4, 128 }
  0x35   :  { %p226_p10 = scmp.ne.s32.totalorder %s367_s4, %s225_s6  ;;  %p229_p11 = scmp.lt.u32.totalorder %s225_s6, %s367_s4 }
  0x37   :  { %p231_p12 = pnand %p229_p11, %p226_p10 }
  0x39   :  { %234 = shalt.err (!%p231_p12)
}
  0x3a   :  { %s235_s11 = scalar_lea.vmem %s53_s19, 128  ;;  %p240_p0 = scmp.lt.s32.totalorder %s53_s19, %s53_s19 }
  0x3b   :  { %p236_p13 = scmp.ne.s32.totalorder %s53_s19, %s235_s11  ;;  %p241_p1 = scmp.lt.s32.totalorder %s235_s11, %s235_s11 }
  0x3d   :  { %p242_p2 = por %p241_p1, %p240_p0 }
  0x3f   :  { %p243_p3 = pnand %p242_p2, %p236_p13 }
  0x41   :  { %246 = shalt.err (!%p243_p3)
}
  0x42   :  { %55 = dma.hbm_to_vmem [thread:$0]  %s367_s4, 128, %s53_s19, [#allocation10]  }
  0x43   :  { %257 = dma.done.wait [#allocation4], 128  }
  0x44   :  { %258 = vsyncadd [#allocation4], 4294967168 }
  0x45   :  { %259 = dma.done.wait [#allocation7], 256  }
  0x46   :  { %260 = vsyncadd [#allocation7], 4294967040 }
  0x47   :  { %261 = dma.done.wait [#allocation10], 128  }
  0x48   :  { %262 = vsyncadd [#allocation10], 4294967168  ;;  %v86_v0 = vlaneseq  ;;  %v74_v1 = vld [vmem:[#allocation3] sm:$0xff]  ;;  %v75_v2 = vld [vmem:[#allocation8] sm:$0xff]  ;;  %vm109_vm1 = vcmask 7168   ;;  %s247_s16 = scalar_lea.hbm %s368_s5, 16 }
  0x49   :  { %v77_v3 = vld [vmem:[#allocation9] sm:$0xff]  ;;  %v76_v4 = vsub.f32 %v74_v1, %v75_v2  ;;  %v79_v5 = vld [vmem:[#allocation6] sm:$0xff]  ;;  %v80_v6 = vld [vmem:[%s366_s3] sm:$0xff]  ;;  %p248_p4 = scmp.ne.s32.totalorder %s368_s5, %s247_s16  ;;  %p251_p5 = scmp.lt.u32.totalorder %s247_s16, %s368_s5 }
  0x4a   :  { %v81_v7 = vsub.f32 %v79_v5, %v80_v6  ;;  %v87_v9 = vand.u32 127, %v86_v0 }
  0x4b   :  { %v78_v8 = vmul.f32 %v77_v3, %v76_v4  ;;  %p253_p6 = pnand %p251_p5, %p248_p4 }
  0x4c   :  { %v82_v10 = vmul.f32 %v81_v7, %v77_v3  ;;  %vm88_vm0 = vcmp.lt.s32.totalorder %v87_v9, 8 }
  0x4d   :  { %v83_v11 = vmul.f32 %v78_v8, %v78_v8 }
  0x4e   :  { %v84_v12 = vmul.f32 %v82_v10, %v82_v10 }
  0x50   :  { %v85_v13 = vadd.f32 %v84_v12, %v83_v11 }
  0x52   :  { %v89_v14 = vsel %vm88_vm0, %v85_v13, -inf }
  0x53   :  { %90 = vmax.xlane.f32.xlu0 %v89_v14 }
  0xe0   :  { %v91_v15 = vpop.xlane.xlu0 %90 }
  0xe1   :  { %v92_v16 = vsub.f32 %v89_v14, %v91_v15 }
  0xe3   :  { %v93_v17 = vmul.f32 1.442695, %v92_v16 }
  0xe5   :  { %155 = vpow2.f32 %v93_v17 }
  0xef   :  { %v156_v18 = vpop.eup %155 }
  0xf0   :  { %95 = vadd.xlane.f32.xlu0 %v156_v18 }
 0x17d   :  { %v96_v19 = vpop.xlane.xlu0 %95 }
 0x17e   :  { %157 = vlog2.f32 %v96_v19 }
 0x188   :  { %v158_v20 = vpop.eup %157 }
 0x189   :  { %v98_v21 = vmul.f32 0.6931472, %v158_v20 }
 0x18b   :  { %v99_v22 = vadd.f32 %v98_v21, %v91_v15 }
 0x18d   :  { %v100_v23 = vsub.f32 0.0, %v99_v22 }
 0x18f   :  { %v110_v24 = vsel %vm109_vm1, %v100_v23, 0.0 }
 0x190   :  { %111 = vadd.xlane.f32.xlu1 %v110_v24 }
 0x21d   :  { %v112_v25 = vpop.xlane.xlu1 %111 }
 0x21e   :  { %v113_v26 = vrot.slane %v112_v25, 4 }
 0x220   :  { %v114_v27 = vadd.f32 %v113_v26, %v112_v25 }
 0x222   :  { %v115_v28 = vrot.slane %v114_v27, 2 }
 0x224   :  { %v116_v29 = vadd.f32 %v115_v28, %v114_v27 }
 0x226   :  { %v117_v30 = vrot.slane %v116_v29, 1 }
 0x228   :  { %v118_v31 = vadd.f32 %v117_v30, %v116_v29 }
 0x22a   :  { %148 = vpush %v118_v31 }
 0x25b   :  { %s149_s3 = spop %148 }
 0x25c   :  { %s129_s4 = smul.f32 0.125, %s149_s3 }
 0x25e   :  { %131 = sst [smem:[#allocation11]] %s129_s4 }
 0x25f   :  { %256 = shalt.err (!%p253_p6)
}
 0x260   :  { %s269_s22 = smov [#allocation11]  }
 0x261   :  { %139 = dma.smem_to_hbm %s269_s22, 16, %s368_s5, [#allocation5]  }
 0x262   :  { %263 = dma.done.wait [#allocation5], 16  }
 0x263   :  { %264 = vsyncadd [#allocation5], 4294967280 }
 0x264   :  { %143 = sfence }
 0x265   :  { %144 = vsyncpa [#allocation4], 1 }
 0x266   :  { %145 = vsyncpa [#allocation7], 1 }
 0x267   :  { %146 = vsyncpa [#allocation10], 1 }
 0x268   :  { %147 = vsyncpa [#allocation5], 1 }

</bundles_post_ra>
